<compile_context>
chip_gen: v5e
topology: v5e:2x2
jax: 0.10.0
libtpu: 0.0.40
codegen_flags: <defaults>
</compile_context>

<pallas_src>
import functools

import jax
import jax.numpy as jnp
from jax.experimental import pallas as pl
from jax.experimental.pallas import tpu as pltpu

EPS = 1e-5


# ----------------------------------------------------------------------------
# Kernel
# ----------------------------------------------------------------------------
def ann_kernel(x_ref, w1t_ref, w2t_ref, pack_ref, o_ref):
    """Fused MLP forward, transposed-activation layout (features on sublanes, batch on lanes)."""
    H1 = w1t_ref.shape[0]
    H2 = w2t_ref.shape[0]

    # Packed small params as columns of a (Hmax, 4) f32 array:
    #   col 0 = b1 (H1), col 1 = b2 (H2), col 2 = b3 (1), col 3 = w3 (H2)
    b1 = pack_ref[0:H1, 0:1]          # (H1, 1)
    b2 = pack_ref[0:H2, 1:2]          # (H2, 1)
    b3 = pack_ref[0:1, 2:3]           # (1, 1)
    w3 = pack_ref[0:H2, 3:4]          # (H2, 1)

    x = x_ref[...].astype(jnp.bfloat16)               # (tb, IL); no-op if producer sends bf16

    # FC1 (+BN1 folded): W1 @ x^T, contracting IL of both operands -> (H1, tb), batch on lanes.
    h = jax.lax.dot_general(
        w1t_ref[...], x,
        dimension_numbers=(((1,), (1,)), ((), ())),
        preferred_element_type=jnp.float32)
    h = jnp.maximum(h + b1, 0.0)

    # FC2 (+BN2 folded): W2 @ h -> (H2, tb).
    h = jnp.dot(w2t_ref[...], h.astype(jnp.bfloat16),
                preferred_element_type=jnp.float32)
    h = jnp.maximum(h + b2, 0.0)

    # FC3 (+BN3 folded), single output row: weighted sublane reduce -> lane-dense (1, tb).
    logits = jnp.sum(h * w3, axis=0, keepdims=True) + b3
    o_ref[...] = jax.nn.sigmoid(logits)[None]         # (1, 1, tb), lane-dense store


# ----------------------------------------------------------------------------
# Wrapper
# ----------------------------------------------------------------------------
def _round_up(n, m):
    return ((n + m - 1) // m) * m


@functools.partial(jax.jit, static_argnames=("tb",))
def ann_forward(x, kparams, *, tb=4096):
    """x: (B, IL) in f32 or bf16. Returns (B, 1) f32 probabilities."""
    B, IL = x.shape
    w1t, w2t, pack = kparams["w1t"], kparams["w2t"], kparams["pack"]
    H1, H2 = w1t.shape[0], w2t.shape[0]

    # Batch tile: large (fewer grid steps), but capped so the grid has >= 2 steps for megacore
    # sharding on v7x. Align to 128 lanes when possible (lane-dense unmasked stores), else 8.
    half = pl.cdiv(B, 2)
    align = 128 if half >= 128 else 8
    tb_eff = max(8, min(tb, _round_up(half, align)))
    grid_n = pl.cdiv(B, tb_eff)                       # ragged last block handled by Pallas

    flops = 2 * B * (IL * H1 + H1 * H2 + H2)
    bytes_accessed = (B * IL * x.dtype.itemsize + B * 4
                      + w1t.size * w1t.dtype.itemsize
                      + w2t.size * w2t.dtype.itemsize
                      + pack.size * pack.dtype.itemsize)

    out = pl.pallas_call(
        ann_kernel,
        out_shape=jax.ShapeDtypeStruct((grid_n, 1, tb_eff), jnp.float32),
        grid_spec=pltpu.PrefetchScalarGridSpec(
            num_scalar_prefetch=0,
            grid=(grid_n,),
            in_specs=[
                pl.BlockSpec((tb_eff, IL), lambda i: (i, 0)),   # x: tiled over batch
                pl.BlockSpec((H1, IL), lambda i: (0, 0)),       # weights resident across grid
                pl.BlockSpec((H2, H1), lambda i: (0, 0)),
                pl.BlockSpec(pack.shape, lambda i: (0, 0)),     # packed biases + w3 column
            ],
            out_specs=pl.BlockSpec((1, 1, tb_eff), lambda i: (i, 0, 0)),
        ),
        compiler_params=pltpu.CompilerParams(
            dimension_semantics=("parallel",),
        ),
        cost_estimate=pl.CostEstimate(
            flops=flops, transcendentals=B, bytes_accessed=bytes_accessed),
    )(x, w1t, w2t, pack)

    # (grid_n, 1, tb_eff) lane-dense slab -> (B, 1); tail rows (if any) are discarded.
    return out.reshape(grid_n * tb_eff)[:B].reshape(B, 1)


# ----------------------------------------------------------------------------
# Parameter construction / folding (pure JAX, done once outside the kernel)
# ----------------------------------------------------------------------------
def weight_norm_effective(v, g):
    """PyTorch weight_norm (dim=0): W[o,:] = g[o] * v[o,:] / ||v[o,:]||_2."""
    norm = jnp.sqrt(jnp.sum(v * v, axis=1, keepdims=True))
    return g * v / norm


def make_raw_params(key, IL, HL, OL):
    """Deterministic synthetic parameters matching the PyTorch module's state."""
    assert len(HL) == 2, "This script implements the depth-2 branch."
    keys = jax.random.split(key, 12)

    def linear(kv, kg, kb, fan_in, fan_out):
        v = jax.random.normal(kv, (fan_out, fan_in), jnp.float32) * 0.1   # weight_norm 'v'
        g = jax.random.uniform(kg, (fan_out, 1), jnp.float32, 0.5, 1.5)   # weight_norm 'g'
        b = jax.random.normal(kb, (fan_out,), jnp.float32) * 0.05
        return dict(v=v, g=g, b=b)

    def bn(k, feat):
        kg, kb, km, kv_ = jax.random.split(k, 4)
        return dict(
            gamma=jax.random.uniform(kg, (feat,), jnp.float32, 0.8, 1.2),
            beta=jax.random.normal(kb, (feat,), jnp.float32) * 0.1,
            mean=jax.random.normal(km, (feat,), jnp.float32) * 0.1,
            var=jax.random.uniform(kv_, (feat,), jnp.float32, 0.5, 1.5),
        )

    return dict(
        fc1=linear(keys[0], keys[1], keys[2], IL, HL[0]),
        fc2=linear(keys[3], keys[4], keys[5], HL[0], HL[1]),
        fc3=linear(keys[6], keys[7], keys[8], HL[1], OL),
        bn1=bn(keys[9], IL),
        bn2=bn(keys[10], HL[0]),
        bn3=bn(keys[11], HL[1]),
    )


def fold_params(raw):
    """Fold weight_norm and eval-mode BatchNorm into each Linear layer.

    y = ((x*s + t) @ W + b)  with  s = gamma*rsqrt(var+eps), t = beta - mean*s
      =>  W' = s[:,None] * W ,  b' = t @ W + b     (W stored as (in, out))
    """
    def fold(bn, fc):
        w_eff = weight_norm_effective(fc["v"], fc["g"]).T        # (in, out)
        s = bn["gamma"] * jax.lax.rsqrt(bn["var"] + EPS)         # (in,)
        t = bn["beta"] - bn["mean"] * s                          # (in,)
        w_folded = s[:, None] * w_eff                            # (in, out)
        b_folded = t @ w_eff + fc["b"]                           # (out,)
        return w_folded, b_folded

    return (
        fold(raw["bn1"], raw["fc1"]),
        fold(raw["bn2"], raw["fc2"]),
        fold(raw["bn3"], raw["fc3"]),
    )


def make_kernel_params(raw):
    (w1, b1), (w2, b2), (w3, b3) = fold_params(raw)              # w: (in, out)
    H1, H2, OL = w1.shape[1], w2.shape[1], w3.shape[1]
    assert OL == 1, "Kernel computes FC3 as a sublane reduction (OL must be 1)."
    hmax = max(H1, H2, 1)

    def pad_col(v):
        v = v.reshape(-1, 1)
        return jnp.pad(v, ((0, hmax - v.shape[0]), (0, 0)))

    # One small (Hmax, 4) f32 operand: columns = b1 | b2 | b3 | w3.
    pack = jnp.concatenate(
        [pad_col(b1), pad_col(b2), pad_col(b3), pad_col(w3[:, 0])], axis=1
    ).astype(jnp.float32)

    return dict(
        w1t=w1.T.astype(jnp.bfloat16),   # (H1, IL)
        w2t=w2.T.astype(jnp.bfloat16),   # (H2, H1)
        pack=pack,                       # (Hmax, 4)
    )


# ----------------------------------------------------------------------------
# Pure-JAX reference of the eval-mode PyTorch forward (no folding, f32)
# ----------------------------------------------------------------------------
def ann_reference(x, raw):
    def bn_eval(h, bn):
        return (h - bn["mean"]) * jax.lax.rsqrt(bn["var"] + EPS) * bn["gamma"] + bn["beta"]

    def linear(h, fc):
        w = weight_norm_effective(fc["v"], fc["g"])   # (out, in)
        return h @ w.T + fc["b"]

    h = bn_eval(x, raw["bn1"])                        # Dropout p=0.2 -> identity (eval)
    h = jnp.maximum(linear(h, raw["fc1"]), 0.0)
    h = bn_eval(h, raw["bn2"])                        # Dropout p=0.5 -> identity (eval)
    h = jnp.maximum(linear(h, raw["fc2"]), 0.0)
    h = bn_eval(h, raw["bn3"])                        # Dropout p=0.5 -> identity (eval)
    return jax.nn.sigmoid(linear(h, raw["fc3"]))


if __name__ == "__main__":
    # Small shapes consistent with the tabular Churn-Modelling MLP.
    B, IL, HL, OL = 64, 16, (32, 16), 1

    key = jax.random.PRNGKey(0)
    kx, kp = jax.random.split(key)
    x = jax.random.normal(kx, (B, IL), jnp.float32)

    raw = make_raw_params(kp, IL, HL, OL)
    kparams = make_kernel_params(raw)

    out = ann_forward(x, kparams)        # tb auto-capped -> tile=32, grid=(2,)
    out = jax.block_until_ready(out)

    ref = ann_reference(x, raw)
    assert out.shape == (B, OL)
    # bf16 MXU inputs + BN folding reassociation -> bf16-appropriate tolerance vs f32 reference.
    assert jnp.allclose(out, ref, atol=2e-2, rtol=2e-2), (
        f"Pallas output mismatch vs reference, max abs err = {jnp.max(jnp.abs(out - ref))}"
    )

    print("KERNEL_OK")
</pallas_src>

<mosaic_0001>
module attributes {stable_mosaic.version = 11 : i64} {
  func.func @ann_kernel(%arg0: i32, %arg1: memref<32x16xf32, #tpu.memory_space<vmem>>, %arg2: memref<32x16xbf16, #tpu.memory_space<vmem>>, %arg3: memref<16x32xbf16, #tpu.memory_space<vmem>>, %arg4: memref<32x4xf32, #tpu.memory_space<vmem>>, %arg5: memref<1x1x32xf32, #tpu.memory_space<vmem>>) attributes {dimension_semantics = [#tpu.dimension_semantics<parallel>], iteration_bounds = array<i64: 2>, scalar_prefetch = 0 : i64, scratch_operands = 0 : i64, tpu.core_type = #tpu.core_type<tc>, window_params = [{transform_indices = @transform_0, window_bounds = array<i64: 32, 16>}, {pipeline_mode = #tpu.pipeline_mode<synchronous>, transform_indices = @transform_1, window_bounds = array<i64: 32, 16>}, {pipeline_mode = #tpu.pipeline_mode<synchronous>, transform_indices = @transform_2, window_bounds = array<i64: 16, 32>}, {pipeline_mode = #tpu.pipeline_mode<synchronous>, transform_indices = @transform_3, window_bounds = array<i64: 32, 4>}, {transform_indices = @transform_4, window_bounds = array<i64: 1, 1, 32>}]} {
    %c0 = arith.constant 0 : index
    %c0_0 = arith.constant 0 : index
    %0 = vector.load %arg4[%c0, %c0_0] : memref<32x4xf32, #tpu.memory_space<vmem>>, vector<32x1xf32>
    %c0_1 = arith.constant 0 : index
    %c1 = arith.constant 1 : index
    %1 = vector.load %arg4[%c0_1, %c1] : memref<32x4xf32, #tpu.memory_space<vmem>>, vector<16x1xf32>
    %c0_2 = arith.constant 0 : index
    %c2 = arith.constant 2 : index
    %2 = vector.load %arg4[%c0_2, %c2] : memref<32x4xf32, #tpu.memory_space<vmem>>, vector<1x1xf32>
    %c0_3 = arith.constant 0 : index
    %c3 = arith.constant 3 : index
    %3 = vector.load %arg4[%c0_3, %c3] : memref<32x4xf32, #tpu.memory_space<vmem>>, vector<16x1xf32>
    %c0_4 = arith.constant 0 : index
    %c0_5 = arith.constant 0 : index
    %4 = vector.load %arg1[%c0_4, %c0_5] : memref<32x16xf32, #tpu.memory_space<vmem>>, vector<32x16xf32>
    %5 = arith.truncf %4 : vector<32x16xf32> to vector<32x16xbf16>
    %c0_6 = arith.constant 0 : index
    %c0_7 = arith.constant 0 : index
    %6 = vector.load %arg2[%c0_6, %c0_7] : memref<32x16xbf16, #tpu.memory_space<vmem>>, vector<32x16xbf16>
    %cst = arith.constant dense<0.000000e+00> : vector<32x32xf32>
    %7 = tpu.matmul %6, %5, %cst {dimension_numbers = #tpu.dot_dimension_numbers<[1], [1], [0], [0], [0, 0, 1, 0], [], []>} : vector<32x16xbf16>, vector<32x16xbf16>, vector<32x32xf32> -> vector<32x32xf32>
    %8 = vector.broadcast %0 : vector<32x1xf32> to vector<32x32xf32>
    %9 = arith.addf %7, %8 : vector<32x32xf32>
    %cst_8 = arith.constant 0.000000e+00 : f32
    %10 = vector.broadcast %cst_8 : f32 to vector<32x32xf32>
    %11 = arith.maximumf %9, %10 : vector<32x32xf32>
    %c0_9 = arith.constant 0 : index
    %c0_10 = arith.constant 0 : index
    %12 = vector.load %arg3[%c0_9, %c0_10] : memref<16x32xbf16, #tpu.memory_space<vmem>>, vector<16x32xbf16>
    %13 = arith.truncf %11 : vector<32x32xf32> to vector<32x32xbf16>
    %cst_11 = arith.constant dense<0.000000e+00> : vector<16x32xf32>
    %14 = tpu.matmul %12, %13, %cst_11 {dimension_numbers = #tpu.dot_dimension_numbers<[1], [0], [0], [1], [0, 0, 1, 1], [], []>} : vector<16x32xbf16>, vector<32x32xbf16>, vector<16x32xf32> -> vector<16x32xf32>
    %15 = vector.broadcast %1 : vector<16x1xf32> to vector<16x32xf32>
    %16 = arith.addf %14, %15 : vector<16x32xf32>
    %cst_12 = arith.constant 0.000000e+00 : f32
    %17 = vector.broadcast %cst_12 : f32 to vector<16x32xf32>
    %18 = arith.maximumf %16, %17 : vector<16x32xf32>
    %19 = vector.broadcast %3 : vector<16x1xf32> to vector<16x32xf32>
    %20 = arith.mulf %18, %19 : vector<16x32xf32>
    %cst_13 = arith.constant dense<0.000000e+00> : vector<32xf32>
    %21 = vector.multi_reduction <add>, %20, %cst_13 [0] : vector<16x32xf32> to vector<32xf32>
    %22 = vector.shape_cast %21 : vector<32xf32> to vector<1x32xf32>
    %23 = vector.broadcast %2 : vector<1x1xf32> to vector<1x32xf32>
    %24 = arith.addf %22, %23 : vector<1x32xf32>
    %25 = arith.negf %24 : vector<1x32xf32>
    %26 = math.exp %25 : vector<1x32xf32>
    %cst_14 = arith.constant 1.000000e+00 : f32
    %27 = vector.broadcast %cst_14 : f32 to vector<1x32xf32>
    %28 = arith.addf %27, %26 : vector<1x32xf32>
    %29 = arith.divf %27, %28 : vector<1x32xf32>
    %30 = vector.shape_cast %29 : vector<1x32xf32> to vector<1x1x32xf32>
    %c0_15 = arith.constant 0 : index
    %c0_16 = arith.constant 0 : index
    %c0_17 = arith.constant 0 : index
    %31 = vector.load %arg5[%c0_15, %c0_16, %c0_17] : memref<1x1x32xf32, #tpu.memory_space<vmem>>, vector<1x1x32xf32>
    tpu.vector_store %arg5[%c0_15, %c0_16, %c0_17], %30 {strides = array<i32>} : memref<1x1x32xf32, #tpu.memory_space<vmem>>, vector<1x1x32xf32>,
    return
  }
  func.func @transform_0(%arg0: i32) -> (i32, i32) {
    %c0_i32 = arith.constant 0 : i32
    %c0_i32_0 = arith.constant 0 : i32
    return %arg0, %c0_i32 : i32, i32
  }
  func.func @transform_1(%arg0: i32) -> (i32, i32) {
    %c0_i32 = arith.constant 0 : i32
    %c0_i32_0 = arith.constant 0 : i32
    %c0_i32_1 = arith.constant 0 : i32
    return %c0_i32, %c0_i32_0 : i32, i32
  }
  func.func @transform_2(%arg0: i32) -> (i32, i32) {
    %c0_i32 = arith.constant 0 : i32
    %c0_i32_0 = arith.constant 0 : i32
    %c0_i32_1 = arith.constant 0 : i32
    return %c0_i32, %c0_i32_0 : i32, i32
  }
  func.func @transform_3(%arg0: i32) -> (i32, i32) {
    %c0_i32 = arith.constant 0 : i32
    %c0_i32_0 = arith.constant 0 : i32
    %c0_i32_1 = arith.constant 0 : i32
    return %c0_i32, %c0_i32_0 : i32, i32
  }
  func.func @transform_4(%arg0: i32) -> (i32, i32, i32) {
    %c0_i32 = arith.constant 0 : i32
    %c0_i32_0 = arith.constant 0 : i32
    %c0_i32_1 = arith.constant 0 : i32
    return %arg0, %c0_i32, %c0_i32_0 : i32, i32, i32
  }
}

</mosaic_0001>

<bundles_post_ra>
// kernel: ann_forward.1
= control target key start
LH: loop header
LB: loop body
LE: loop exit
PB: predicated region body
PF: predicated region fallthrough
CT: control target
= control target key end

     0   :  { %s498_s15 = smov 0   ;;  %s548_s0 = inlined_call_operand.vmem [shape: f32[64,16], index: 0, kind: input, shape index: {}]   ;;  %s549_s1 = inlined_call_operand.vmem [shape: bf16[32,16], index: 1, kind: input, shape index: {}]   ;;  %s550_s2 = inlined_call_operand.vmem [shape: bf16[16,32], index: 2, kind: input, shape index: {}]   ;;  %s551_s3 = inlined_call_operand.vmem [shape: f32[32,4], index: 3, kind: input, shape index: {}]   ;;  %s552_s4 = inlined_call_operand.vmem [shape: f32[2,1,32], index: 4, kind: output, shape index: {}]  }
   0x1 LB: > { %s504_s16 = sadd.s32 4294967295, %s467_s15   ;;  %p412_p0 = scmp.ge.s32.totalorder %s467_s15, 1  ;;  %s467_s15 = sphi %s498_s15, %s14_s15  }
   0x2   : > { %p163_p1 = scmp.lt.s32.totalorder %s467_s15, 3 }
   0x4   : > { %p164_p2 = pnand %p412_p0, %p163_p1 }
   0x5   : > { %s413_s17 = sshll.u32 (!%p164_p2), %s504_s16, 2  ;;  %p193_p4 = scmp.lt.s32.totalorder (!%p164_p2), %s504_s16, 1 }
   0x6   : > { %167 = sbr.rel (%p164_p2) target bundleno = 372 (0x174), region = 36  ;;  %p188_p3 = scmp.lt.s32.totalorder (!%p164_p2), %s413_s17, 7 }
   0xb   : > { %v199_v0 = vld [vmem:[%s551_s3 + $0x10] sm:$0xff]  ;;  %v469_v1 = vmov 0   ;;  %v197_v2 = vld [vmem:[%s551_s3] sm:$0xff]  ;;  %s554_s17 = smov (!%p188_p3, %s413_s17), 7  ;;  %v200_v3 = vld [vmem:[%s551_s3 + $0x18] sm:$0xff]  ;;  %vm242_vm0 = vcmask 130048  }
   0xc   : > { %450 = vset.pattern.permute.xlu0 %v469_v1  ;;  %451 = vset.pattern.permute.xlu1 %v469_v1  ;;  %s414_s22 = sshll.u32 %s554_s17, 3  ;;  %v198_v6 = vld [vmem:[%s551_s3 + $0x8] sm:$0xff]  ;;  %v433_v14 = vld [vmem:[%s549_s1] sm:$0xff]  ;;  %v470_v15 = vmov 3   ;;  %v471_v16 = vmov 1   ;;  %v472_v21 = vmov 2  }
   0xd   : > { %224 = vperm.xlu0 %450, %v199_v0   ;;  %214 = vperm.xlu1 %451, %v197_v2   ;;  %s191_s25 = scalar_lea.vmem %s548_s0, %s414_s22  ;;  %v434_v13 = vld [vmem:[%s549_s1 + $0x8] sm:$0xff]  ;;  %v201_v27 = vld [vmem:[%s551_s3] sm:$0x1]  ;;  %vm295_vm1 = vcmask 261120   ;;  %s556_s16 = smov (!%p193_p4, %s504_s16), 1  ;;  %vm359_vm4 = vcmask 253952  }
   0xe   : > { %v204_v4 = vld [vmem:[%s191_s25 + $0x10] sm:$0xff]  ;;  %v205_v5 = vld [vmem:[%s191_s25 + $0x18] sm:$0xff]  ;;  %v202_v8 = vld [vmem:[%s191_s25] sm:$0xff]  ;;  %452 = vset.pattern.permute.xlu2 %v471_v16  ;;  %s195_s14 = scalar_lea.vmem %s552_s4, %s556_s16 }
   0xf   : > { %v207_v7 = vpack.c.bf16 %v205_v5, %v204_v4  ;;  %v203_v9 = vld [vmem:[%s191_s25 + $0x8] sm:$0xff]  ;;  %283 = vperm.xlu2 %452, %v197_v2   ;;  %v435_v37 = vld [vmem:[%s550_s2] sm:$0xff] }
  0x10   : > { %v206_v11 = vpack.c.bf16 %v203_v9, %v202_v8 }
  0x11   : > { %v253_v10 = vsel %vm242_vm0, %v207_v7, 0 }
  0x12   : > { %436 = vmatpush.bf16.xpose.msra.mxu2 %v253_v10  ;;  %261 = vmatpush.bf16.xpose.msra.mxu0 %v253_v10  ;;  %v250_v12 = vsel %vm242_vm0, %v206_v11, 0 }
  0x15   : > { %229 = vperm.xlu0 %450, %v200_v3   ;;  %219 = vperm.xlu1 %451, %v198_v6  }
  0x17   : > { %287 = vperm.xlu2 %452, %v198_v6  }
  0x1a   : > { %437 = vmatpush.bf16.xpose.msra.mxu2 %v250_v12  ;;  %262 = vmatpush.bf16.xpose.msra.mxu0 %v250_v12 }
  0x1d   : > { %453 = vset.pattern.permute.xlu0 %v470_v15  ;;  %454 = vset.pattern.permute.xlu1 %v470_v15 }
  0x1e   : > { %316 = vperm.xlu0 %453, %v197_v2   ;;  %320 = vperm.xlu1 %454, %v198_v6  }
  0x1f   : > { %455 = vset.pattern.permute.xlu2 %v472_v21 }
  0x20   : > { %336 = vperm.xlu2 %455, %v201_v27  }
  0x21   : > { %424 = vmatmul.msk.bf16.vlgmr.msra.gmra.mxu2 %vm242_vm0, %v434_v13  ;;  %423 = vmatmul.msk.bf16.vlgmr.msra.gmra.mxu0 %vm242_vm0, %v433_v14 }
  0x26   : > { %456 = vset.pattern.permute.xlu0 %v472_v21 }
  0x69   : > { %v284_v38 = vpop.permute.xlu2 %283 }
  0x71   : > { %v288_v41 = vpop.permute.xlu2 %287 }
  0x7a   : > { %v337_v58 = vpop.permute.xlu2 %336 }
  0x7f   : > { %v215_v17 = vpop.permute.xlu1 %214  ;;  %v225_v19 = vpop.permute.xlu0 %224 }
  0x87   : > { %v220_v22 = vpop.permute.xlu1 %219  ;;  %v230_v25 = vpop.permute.xlu0 %229 }
  0x90   : > { %v317_v43 = vpop.permute.xlu0 %316  ;;  %v321_v46 = vpop.permute.xlu1 %320 }
  0x9e   : > { %v264_v18 = vpop.f32.mrf.mxu0 }
  0x9f   : > { %v265_v28 = vadd.f32 %v264_v18, %v215_v17 }
  0xa1   : > { %v274_v33 = vmax.f32 %v265_v28, 0.0 }
  0xa4   : > { %v269_v20 = vpop.f32.mrf.mxu2 }
  0xa5   : > { %v270_v24 = vadd.f32 %v269_v20, %v225_v19 }
  0xa6   : > { %v266_v23 = vpop.f32.mrf.mxu0 }
  0xa7   : > { %v267_v29 = vadd.f32 %v266_v23, %v220_v22  ;;  %v276_v31 = vmax.f32 %v270_v24, 0.0 }
  0xa9   : > { %v275_v34 = vmax.f32 %v267_v29, 0.0 }
  0xab   : > { %v280_v36 = vpack.c.bf16 %v275_v34, %v274_v33 }
  0xac   : > { %v271_v26 = vpop.f32.mrf.mxu2 }
  0xad   : > { %v272_v30 = vadd.f32 %v271_v26, %v230_v25 }
  0xaf   : > { %v277_v32 = vmax.f32 %v272_v30, 0.0 }
  0xb1   : > { %v281_v35 = vpack.c.bf16 %v277_v32, %v276_v31 }
  0xb3   : > { %305 = vmatpush.bf16.msra.mxu1 %v281_v35 }
  0xb7   : > { %306 = vmatpush.bf16.msra.mxu1 %v280_v36 }
  0xba   : > { %429 = vmatmul.msk.bf16.vlgmr.msra.gmra.mxu1 %vm295_vm1, %v435_v37 }
 0x137   : > { %v308_v39 = vpop.f32.mrf.mxu1 }
 0x138   : > { %v309_v40 = vadd.f32 %v308_v39, %v284_v38 }
 0x13a   : > { %v313_v42 = vmax.f32 %v309_v40, 0.0 }
 0x13c   : > { %v323_v47 = vmul.f32 %v317_v43, %v313_v42 }
 0x13e   : > { %v325_v50 = vsel %vm295_vm1, %v323_v47, 0.0 }
 0x13f   : > { %v310_v44 = vpop.f32.mrf.mxu1 }
 0x140   : > { %v311_v45 = vadd.f32 %v310_v44, %v288_v41 }
 0x142   : > { %v314_v48 = vmax.f32 %v311_v45, 0.0 }
 0x144   : > { %v324_v49 = vmul.f32 %v321_v46, %v314_v48 }
 0x146   : > { %v326_v51 = vsel %vm295_vm1, %v324_v49, 0.0 }
 0x147   : > { %v327_v52 = vadd.f32 %v326_v51, %v325_v50 }
 0x149   : > { %v328_v53 = vrot.slane %v327_v52, 4 }
 0x14b   : > { %v329_v54 = vadd.f32 %v328_v53, %v327_v52 }
 0x14d   : > { %v330_v55 = vrot.slane %v329_v54, 2 }
 0x14f   : > { %v331_v56 = vadd.f32 %v330_v55, %v329_v54 }
 0x151   : > { %v332_v57 = vrot.slane %v331_v56, 1 }
 0x153   : > { %v333_v59 = vadd.f32 %v332_v57, %v331_v56 }
 0x155   : > { %v339_v60 = vadd.f32 %v337_v58, %v333_v59 }
 0x157   : > { %v430_v61 = vmul.f32 -1.442695, %v339_v60 }
 0x159   : > { %457 = vpow2.f32 %v430_v61 }
 0x15f   : > { %v458_v62 = vpop.eup %457 }
 0x160   : > { %v343_v63 = vadd.f32 1.0, %v458_v62 }
 0x162   : > { %459 = vrcp.f32 %v343_v63  ;;  %v355_v3 = vand.u32 2147483648, %v343_v63  ;;  %v353_v5 = vand.u32 2147483647, %v343_v63  ;;  %vm349_vm3 = vweird.f32 %v343_v63 }
 0x164   : > { %v356_v7 = vor.u32 1.1754944e-38, %v355_v3  ;;  %vm354_vm6 = vcmp.eq.f32.partialorder %v353_v5, 8.507059e+37 }
 0x168   : > { %v460_v0 = vpop.eup %459 }
 0x169   : > { %v345_v1 = vmul.f32 %v460_v0, %v343_v63  ;;  %vm350_vm2 = vweird.f32 %v460_v0 }
 0x16a   : > { %vm351_vm5 = vmor %vm349_vm3, %vm350_vm2 }
 0x16b   : > { %v346_v2 = vsub.f32 1.0, %v345_v1 }
 0x16d   : > { %v347_v4 = vmul.f32 %v460_v0, %v346_v2 }
 0x16f   : > { %v348_v6 = vadd.f32 %v460_v0, %v347_v4 }
 0x171   : > { %v352_v8 = vsel %vm351_vm5, %v460_v0, %v348_v6 }
 0x172   : > { %v357_v9 = vsel %vm354_vm6, %v356_v7, %v352_v8 }
 0x173   : > { %360 = vst.msk [vmem:[%s195_s14] sm:$0x1] %vm359_vm4, %v357_v9 }
 0x174 PF: > { %s14_s15 = sadd.s32 1, %s467_s15  }
 0x175   : > { %p11_p5 = scmp.ge.s32.totalorder %s14_s15, 4  }
 0x177   :  { %13 = sbr.rel (!%p11_p5) target bundleno = 1 (0x1), region = 66 }

</bundles_post_ra>
